<compile_context>
chip_gen: v7x
topology: tpu7x:2x2x1
jax: 0.10.0
libtpu: 0.0.40
codegen_flags: <defaults>
</compile_context>

<pallas_src>
import jax
import jax.numpy as jnp
from jax.experimental import pallas as pl
from jax.experimental.pallas import tpu as pltpu

LANE = 128


def _rup(v, m):
    return -(-v // m) * m


def cnn_forward(x, weight, bias, *, block_b=None):
    """x: (N, C_in, L) f32; weight: (C_out, C_in, k); bias: (C_out,) -> (N, C_out)."""
    N, C_in, L = x.shape
    C_out, _, k = weight.shape
    L_out = L - k + 1
    assert L_out >= 1, "sequence length must be >= kernel_size"

    # Pad conv-output length so the (TB, L_out_pad, *) <-> (TB*L_out_pad, *)
    # reshapes stay sublane-tile aligned (16 covers bf16 and f32 tiles).
    L_out_pad = _rup(L_out, 16)
    L_pad = L_out_pad + k - 1
    KC = k * C_in

    # Lane-dense output width: 128 (v5e 128x128 MXU); multiple of 256 above 128
    # (v6e/v7x 256-wide MXU; still a multiple of 128 so also fine on v5e).
    C_out_p = 128 if C_out <= 128 else _rup(C_out, 256)

    # ---- per-chip VMEM budgeting --------------------------------------------
    try:
        vmem_cap = int(getattr(pltpu.get_tpu_info(), "vmem_capacity_bytes",
                               64 * 1024 * 1024))
    except Exception:  # conservative fallback (v7x-sized)
        vmem_cap = 64 * 1024 * 1024
    vmem_limit = min(int(vmem_cap * 0.75), 112 * 1024 * 1024)  # ~96MiB v5e/v6e, ~48MiB v7x
    budget = int(vmem_cap * 0.45)

    # Per-sample VMEM bytes with true lane padding (no hard-coded 128 assumption):
    # double-buffered bf16 input block, bf16 im2col slab value, f32 conv value,
    # double-buffered f32 output block.
    in_b = 2 * _rup(L_pad, 16) * _rup(C_in, LANE) * 2
    slab_b = _rup(L_out_pad, 16) * _rup(KC, LANE) * 2
    conv_b = _rup(L_out_pad, 8) * C_out_p * 4
    out_b = 2 * C_out_p * 4
    per_sample = in_b + slab_b + conv_b + out_b
    fixed = 2 * (_rup(KC, 16) * _rup(C_out_p, LANE) * 2      # weight (double-buffered)
                 + 8 * _rup(C_out_p, LANE) * 4)              # bias

    if block_b is None:
        block_b = max(1, min(N, (budget - fixed) // per_sample))
        if N >= 16:
            # Keep >= 2 grid steps: shards the "parallel" batch axis across both
            # v7x TensorCores and gives the input/output pipeline work to overlap.
            block_b = min(block_b, _rup(pl.cdiv(N, 2), 8))
        if block_b < N:
            # Minimum of 8 keeps the (TB, C_out_p) output block sublane-tileable;
            # the vmem_limit headroom absorbs the (rare) over-budget edge case.
            block_b = max(8, (block_b // 8) * 8)
    TB = int(block_b)
    n_blocks = pl.cdiv(N, TB)
    N_pad = n_blocks * TB

    # ---- operand prep (cast FIRST so the transpose/pad copy moves bf16) ------
    # TODO(synk): for C_in << 128 a lane-dense (TB, L_pad*C_in) input block would
    # cut input VMEM/DMA by ~128/C_in; it needs an in-kernel lane->sublane
    # regroup, left out here for lowering robustness.
    x_nlc = jnp.transpose(x.astype(jnp.bfloat16), (0, 2, 1))          # (N, L, C_in)
    x_nlc = jnp.pad(x_nlc, ((0, N_pad - N), (0, L_pad - L), (0, 0)))  # (N_pad, L_pad, C_in)

    # weight (C_out, C_in, k) -> (k*C_in, C_out_p); row index j*C_in + c matches
    # the lane order of the im2col slab built in-kernel.  Extra columns are zero.
    w2 = jnp.transpose(weight, (2, 1, 0)).reshape(KC, C_out).astype(jnp.bfloat16)
    w2 = jnp.pad(w2, ((0, 0), (0, C_out_p - C_out)))
    b2 = jnp.pad(bias.astype(jnp.float32), (0, C_out_p - C_out)).reshape(1, C_out_p)

    def kernel(x_ref, w_ref, b_ref, o_ref):
        # x_ref: (TB, L_pad, C_in) bf16 | w_ref: (KC, C_out_p) bf16
        # b_ref: (1, C_out_p) f32      | o_ref: (TB, C_out_p) f32
        tb = x_ref.shape[0]

        # im2col as a VALUE: tap j's time window lands in lanes [j*C_in, (j+1)*C_in).
        # Ref-sliced taps read the resident pipeline buffer directly -- no full-block
        # x materialization, no scratch-slab store/reload.
        slab3 = jnp.concatenate(
            [x_ref[:, j:j + L_out_pad, :] for j in range(k)], axis=-1
        )                                                   # (TB, L_out_pad, KC) bf16
        slab = slab3.reshape(tb * L_out_pad, KC)            # tile-aligned merge

        # One fused MXU matmul, f32 accumulation, lane-dense result.
        conv = jnp.dot(slab, w_ref[...], preferred_element_type=jnp.float32)
        conv = conv.reshape(tb, L_out_pad, C_out_p)

        # Static slice drops padded time steps, then max over time, then
        # bias + ReLU (exact: bias is time-constant, ReLU is monotone).
        pooled = jnp.max(conv[:, :L_out, :], axis=1)        # (TB, C_out_p) f32
        pooled = jnp.maximum(pooled + b_ref[...], 0.0)
        o_ref[...] = pooled.astype(o_ref.dtype)

    out = pl.pallas_call(
        kernel,
        out_shape=jax.ShapeDtypeStruct((N_pad, C_out_p), x.dtype),
        grid_spec=pltpu.PrefetchScalarGridSpec(
            num_scalar_prefetch=0,
            grid=(n_blocks,),
            in_specs=[
                pl.BlockSpec((TB, L_pad, C_in), lambda b: (b, 0, 0)),
                pl.BlockSpec((KC, C_out_p), lambda b: (0, 0)),
                pl.BlockSpec((1, C_out_p), lambda b: (0, 0)),
            ],
            out_specs=pl.BlockSpec((TB, C_out_p), lambda b: (b, 0)),
        ),
        compiler_params=pltpu.CompilerParams(
            # Each grid step owns its output tile -> batch axis is safely
            # parallel (uses both TensorCores on v7x; harmless on v5e/v6e).
            dimension_semantics=("parallel",),
            vmem_limit_bytes=vmem_limit,
        ),
    )(x_nlc, w2, b2)

    return out[:N, :C_out]


def cnn_reference(x, weight, bias):
    """Pure-JAX f32 reference of the PyTorch forward."""
    N, C_in, L = x.shape
    C_out, _, k = weight.shape
    L_out = L - k + 1
    slabs = jnp.stack([x[:, :, j:j + L_out] for j in range(k)], axis=-1)  # (N,C_in,L_out,k)
    conv = jnp.einsum("nctj,ocj->not", slabs, weight) + bias[None, :, None]
    return jnp.max(jnp.maximum(conv, 0.0), axis=2)


if __name__ == "__main__":
    # Small deterministic setup: batch=2, input_ch=4, output_ch=8, seq len=16, k=5.
    N, C_in, C_out, L, k = 2, 4, 8, 16, 5

    key = jax.random.PRNGKey(0)
    kx, kw, kb = jax.random.split(key, 3)

    x = jax.random.normal(kx, (N, C_in, L), dtype=jnp.float32)

    # PyTorch-style Conv1d init: U(-bound, bound), bound = 1/sqrt(C_in * k)
    bound = 1.0 / (C_in * k) ** 0.5
    weight = jax.random.uniform(kw, (C_out, C_in, k), jnp.float32, -bound, bound)
    bias = jax.random.uniform(kb, (C_out,), jnp.float32, -bound, bound)

    out = jax.block_until_ready(cnn_forward(x, weight, bias))
    ref = cnn_reference(x, weight, bias)

    assert out.shape == (N, C_out), out.shape
    # bf16 matmul operands (f32 accumulation) vs full-f32 reference.
    assert jnp.allclose(out, ref, atol=2e-2, rtol=2e-2), (out, ref)

    print("KERNEL_OK")
</pallas_src>

<mosaic_0001>
module attributes {stable_mosaic.version = 11 : i64} {
  func.func @kernel(%arg0: i32, %arg1: memref<2x20x4xbf16, #tpu.memory_space<vmem>>, %arg2: memref<20x128xbf16, #tpu.memory_space<vmem>>, %arg3: memref<1x128xf32, #tpu.memory_space<vmem>>, %arg4: memref<2x128xf32, #tpu.memory_space<vmem>>) attributes {dimension_semantics = [#tpu.dimension_semantics<parallel>], iteration_bounds = array<i64: 1>, scalar_prefetch = 0 : i64, scratch_operands = 0 : i64, tpu.core_type = #tpu.core_type<tc>, window_params = [{transform_indices = @transform_0, window_bounds = array<i64: 2, 20, 4>}, {pipeline_mode = #tpu.pipeline_mode<synchronous>, transform_indices = @transform_1, window_bounds = array<i64: 20, 128>}, {pipeline_mode = #tpu.pipeline_mode<synchronous>, transform_indices = @transform_2, window_bounds = array<i64: 1, 128>}, {transform_indices = @transform_3, window_bounds = array<i64: 2, 128>}]} {
    %c0 = arith.constant 0 : index
    %c0_0 = arith.constant 0 : index
    %c0_1 = arith.constant 0 : index
    %0 = vector.load %arg1[%c0, %c0_0, %c0_1] : memref<2x20x4xbf16, #tpu.memory_space<vmem>>, vector<2x16x4xbf16>
    %c0_2 = arith.constant 0 : index
    %c1 = arith.constant 1 : index
    %c0_3 = arith.constant 0 : index
    %1 = vector.load %arg1[%c0_2, %c1, %c0_3] : memref<2x20x4xbf16, #tpu.memory_space<vmem>>, vector<2x16x4xbf16>
    %c0_4 = arith.constant 0 : index
    %c2 = arith.constant 2 : index
    %c0_5 = arith.constant 0 : index
    %2 = vector.load %arg1[%c0_4, %c2, %c0_5] : memref<2x20x4xbf16, #tpu.memory_space<vmem>>, vector<2x16x4xbf16>
    %c0_6 = arith.constant 0 : index
    %c3 = arith.constant 3 : index
    %c0_7 = arith.constant 0 : index
    %3 = vector.load %arg1[%c0_6, %c3, %c0_7] : memref<2x20x4xbf16, #tpu.memory_space<vmem>>, vector<2x16x4xbf16>
    %c0_8 = arith.constant 0 : index
    %c4 = arith.constant 4 : index
    %c0_9 = arith.constant 0 : index
    %4 = vector.load %arg1[%c0_8, %c4, %c0_9] : memref<2x20x4xbf16, #tpu.memory_space<vmem>>, vector<2x16x4xbf16>
    %5 = tpu.concatenate %0, %1, %2, %3, %4 in 2 : vector<2x16x4xbf16>, vector<2x16x4xbf16>, vector<2x16x4xbf16>, vector<2x16x4xbf16>, vector<2x16x4xbf16> -> vector<2x16x20xbf16>
    %6 = vector.shape_cast %5 : vector<2x16x20xbf16> to vector<32x20xbf16>
    %c0_10 = arith.constant 0 : index
    %c0_11 = arith.constant 0 : index
    %7 = vector.load %arg2[%c0_10, %c0_11] : memref<20x128xbf16, #tpu.memory_space<vmem>>, vector<20x128xbf16>
    %cst = arith.constant dense<0.000000e+00> : vector<32x128xf32>
    %8 = tpu.matmul %6, %7, %cst {dimension_numbers = #tpu.dot_dimension_numbers<[1], [0], [0], [1], [0, 0, 1, 1], [], []>} : vector<32x20xbf16>, vector<20x128xbf16>, vector<32x128xf32> -> vector<32x128xf32>
    %9 = vector.shape_cast %8 : vector<32x128xf32> to vector<2x16x128xf32>
    %10 = vector.extract_strided_slice %9 {offsets = [0, 0, 0], sizes = [2, 12, 128], strides = [1, 1, 1]} : vector<2x16x128xf32> to vector<2x12x128xf32>
    %cst_12 = arith.constant dense<0xFF800000> : vector<2x128xf32>
    %11 = vector.multi_reduction <maximumf>, %10, %cst_12 [1] : vector<2x12x128xf32> to vector<2x128xf32>
    %c0_13 = arith.constant 0 : index
    %c0_14 = arith.constant 0 : index
    %12 = vector.load %arg3[%c0_13, %c0_14] : memref<1x128xf32, #tpu.memory_space<vmem>>, vector<1x128xf32>
    %13 = vector.broadcast %12 : vector<1x128xf32> to vector<2x128xf32>
    %14 = arith.addf %11, %13 : vector<2x128xf32>
    %cst_15 = arith.constant 0.000000e+00 : f32
    %15 = vector.broadcast %cst_15 : f32 to vector<2x128xf32>
    %16 = arith.maximumf %14, %15 : vector<2x128xf32>
    %c0_16 = arith.constant 0 : index
    %c0_17 = arith.constant 0 : index
    %17 = vector.load %arg4[%c0_16, %c0_17] : memref<2x128xf32, #tpu.memory_space<vmem>>, vector<2x128xf32>
    tpu.vector_store %arg4[%c0_16, %c0_17], %16 {strides = array<i32>} : memref<2x128xf32, #tpu.memory_space<vmem>>, vector<2x128xf32>,
    return
  }
  func.func @transform_0(%arg0: i32) -> (i32, i32, i32) {
    %c0_i32 = arith.constant 0 : i32
    %c0_i32_0 = arith.constant 0 : i32
    %c0_i32_1 = arith.constant 0 : i32
    return %arg0, %c0_i32, %c0_i32_0 : i32, i32, i32
  }
  func.func @transform_1(%arg0: i32) -> (i32, i32) {
    %c0_i32 = arith.constant 0 : i32
    %c0_i32_0 = arith.constant 0 : i32
    %c0_i32_1 = arith.constant 0 : i32
    return %c0_i32, %c0_i32_0 : i32, i32
  }
  func.func @transform_2(%arg0: i32) -> (i32, i32) {
    %c0_i32 = arith.constant 0 : i32
    %c0_i32_0 = arith.constant 0 : i32
    %c0_i32_1 = arith.constant 0 : i32
    return %c0_i32, %c0_i32_0 : i32, i32
  }
  func.func @transform_3(%arg0: i32) -> (i32, i32) {
    %c0_i32 = arith.constant 0 : i32
    %c0_i32_0 = arith.constant 0 : i32
    return %arg0, %c0_i32 : i32, i32
  }
}

</mosaic_0001>

<bundles_post_ra>
// kernel: tpu_custom_call.1
= control target key start
LH: loop header
LB: loop body
LE: loop exit
PB: predicated region body
PF: predicated region fallthrough
CT: control target
= control target key end

     0   :  { %vm79_vm0 = vcmask 1046528   ;;  %vm44_vm1 = vsmask.f32 7424  ;;  %s360_s28 = smov 8   ;;  %vm96_vm2 = vsmask.f32 6400  ;;  %s470_s0 = inlined_call_operand.vmem [shape: bf16[2,20,4], index: 0, kind: input, shape index: {}]   ;;  %s471_s1 = inlined_call_operand.vmem [shape: bf16[20,128], index: 1, kind: input, shape index: {}]   ;;  %s472_s2 = inlined_call_operand.vmem [shape: f32[1,128], index: 2, kind: input, shape index: {}]   ;;  %s473_s3 = inlined_call_operand.hbm [shape: f32[2,128], index: 3, kind: output, shape index: {}]  }
   0x1   :  { %v388_v0 = vld [vmem:[%s470_s0 + $0x4] sm:$0xf]  ;;  %v22_v1 = vld [vmem:[%s470_s0] sm:$0xe]  ;;  %v19_v4 = vld [vmem:[%s470_s0 + $0x10] sm:$0xf] }
   0x2   :  { %v324_v2 = vld [vmem:[%s470_s0 + $0x8] ss:$0 sps:$4 sm:$0x11]   ;;  %v397_v3 = vcombine.low %v22_v1, %v388_v0  ;;  %v23_v5 = vld [vmem:[%s470_s0 + $0xc] sm:$0xe]  ;;  %v334_v25 = vld [vmem:[%s471_s1] sm:$0xff]  }
   0x3   :  { %v81_v7 = vrot.slane %v324_v2, 1  ;;  %v326_v8 = vld [vmem:[%s470_s0 + $0x14] ss:$0 sps:$4 sm:$0x11]   ;;  %v296_v9 = vcombine.low %v23_v5, %v19_v4  ;;  %v53_v10 = vshll.u32 %v324_v2, 16  ;;  %310 = vmatprep.subr.bf16.mxu0 %v334_v25  ;;  %vm141_vm3 = vcmask 1045504  }
   0x4   :  { %v80_v6 = vrot.slane %v397_v3, 1  ;;  %v16_v11 = vld [vmem:[%s470_s0] sm:$0xf]  ;;  %v84_v14 = vrot.slane %v326_v8, 1  ;;  %v18_v24 = vld [vmem:[%s470_s0 + $0xc] sm:$0xf]  ;;  %311 = vmatpush3.bf16.msra.mxu0 %v334_v25 }
   0x5   :  { %v83_v13 = vrot.slane %v296_v9, 1  ;;  %v414_v15 = vcombine.low %v16_v11, %v388_v0  ;;  %v329_v16 = vld [vmem:[%s470_s0 + $0x14] ss:$0 sps:$4 sm:$0x33]   ;;  %v55_v17 = vrot.slane %v53_v10, 1  ;;  %v115_v18 = vshrl.u32 %v296_v9, 16 }
   0x6   :  { %v82_v12 = vsel %vm79_vm0, %v80_v6, %v81_v7  ;;  %v118_v19 = vshll.u32 %v296_v9, 16  ;;  %v123_v23 = vshrl.u32 %v329_v16, 16  ;;  %v126_v28 = vshll.u32 %v329_v16, 16  ;;  %v27_v30 = vld [vmem:[%s470_s0 + $0xc] sm:$0xc]  ;;  %s361_s12 = smov 4  }
   0x7   :  { %86 = vrot.lane.b32.xlu1 %v82_v12, %s360_s28  ;;  %v85_v20 = vsel %vm79_vm0, %v83_v13, %v84_v14  ;;  %v46_v21 = vshrl.u32 %v414_v15, 16  ;;  %v48_v22 = vshll.u32 %v414_v15, 16  ;;  %v117_v26 = vrot.slane %v115_v18, 1  ;;  %v332_v39 = vld [vmem:[%s470_s0 + $0x8] ss:$0 sps:$4 sm:$0x33]  }
   0x8   :  { %v120_v27 = vrot.slane %v118_v19, 2  ;;  %v428_v29 = vcombine.low %v18_v24, %v19_v4  ;;  %v125_v32 = vrot.slane %v123_v23, 1  ;;  %v65_v33 = vshll.u32 %v326_v8, 16  ;;  %v26_v43 = vld [vmem:[%s470_s0] sm:$0xc]  ;;  %s362_s0 = smov 12  }
   0x9   :  { %v50_v31 = vrot.slane %v48_v22, 1  ;;  %v300_v34 = vcombine.low %v27_v30, %v19_v4  ;;  %v128_v36 = vrot.slane %v126_v28, 2  ;;  %v146_v46 = vrot.slane %v329_v16, 2  ;;  %v335_v55 = vld [vmem:[%s471_s1 + $0x8] ss:$0 sps:$4 sm:$0x33]  }
   0xa   :  { %v121_v35 = vor.u32 %v120_v27, %v117_v26  ;;  %v58_v37 = vshrl.u32 %v428_v29, 16  ;;  %v60_v38 = vshll.u32 %v428_v29, 16  ;;  %v67_v41 = vrot.slane %v65_v33, 1 }
   0xb   :  { %88 = vrot.lane.b32.xlu1 %v85_v20, %s360_s28  ;;  %v51_v40 = vor.u32 %v50_v31, %v46_v21  ;;  %v145_v42 = vrot.slane %v300_v34, 2  ;;  %v129_v44 = vor.u32 %v128_v36, %v125_v32  ;;  %v98_v47 = vshrl.u32 %v397_v3, 16 }
   0xc   :  { %v62_v45 = vrot.slane %v60_v38, 1  ;;  %v101_v49 = vshll.u32 %v397_v3, 16  ;;  %v106_v50 = vshrl.u32 %v332_v39, 16  ;;  %v109_v51 = vshll.u32 %v332_v39, 16 }
   0xd   :  { %v56_v48 = vsel %vm44_vm1, %v51_v40, %v55_v17  ;;  %v130_v52 = vsel %vm96_vm2, %v121_v35, %v129_v44  ;;  %v100_v54 = vrot.slane %v98_v47, 1  ;;  %v299_v59 = vcombine.low %v26_v43, %v388_v0 }
   0xe   :  { %69 = vrot.lane.b32.xlu0 %v56_v48, %s361_s12  ;;  %v63_v53 = vor.u32 %v62_v45, %v58_v37  ;;  %v103_v56 = vrot.slane %v101_v49, 2  ;;  %v108_v57 = vrot.slane %v106_v50, 1  ;;  %v111_v58 = vrot.slane %v109_v51, 2 }
   0xf   :  { %133 = vrot.lane.b32.xlu1 %v130_v52, %s362_s0 }
  0x10   :  { %8 = vsyncpa [#allocation3], 0  ;;  %v68_v60 = vsel %vm44_vm1, %v63_v53, %v67_v41  ;;  %v147_v61 = vsel %vm141_vm3, %v145_v42, %v146_v46  ;;  %v104_v62 = vor.u32 %v103_v56, %v100_v54  ;;  %v112_v63 = vor.u32 %v111_v58, %v108_v57  ;;  %s363_s15 = smov 16   ;;  %s364_s17 = smov [#allocation2]  }
  0x11   :  { %vm189_vm4 = vcmask 1041408   ;;  %v142_v2 = vrot.slane %v299_v59, 2  ;;  %v143_v3 = vrot.slane %v332_v39, 2  ;;  %vm152_vm5 = vcmask 31744   ;;  %v305_v39 = vld [vmem:[%s472_s2] ss:$0 sm:$0xff] }
  0x12   :  { %71 = vrot.lane.b32.xlu0 %v68_v60, %s361_s12  ;;  %v113_v1 = vsel %vm96_vm2, %v104_v62, %v112_v63  ;;  %318 = vmatprep.subr.msk.bf16.mxu0 %vm189_vm4, %v335_v55  ;;  %v191_v4 = vsel %vm189_vm4, %v335_v55, 0  ;;  %vm157_vm6 = vcmask 64512   ;;  %vm162_vm7 = vcmask 97280   ;;  %s283_s18 = sshll.u32 %s364_s17, 4  ;;  %s284_s18 = int_to_ptr.vmem [resolvable:$true] %s283_s18 }
  0x13   :  { %150 = vrot.lane.b32.xlu1 %v147_v61, %s363_s15  ;;  %313 = vmatpush3.bf16.msra.mxu0 %v191_v4  ;;  %v144_v0 = vsel %vm141_vm3, %v142_v2, %v143_v3  ;;  %vm167_vm8 = vcmask 130048   ;;  %vm184_vm9 = vcmask 162816   ;;  %vm242_vm10 = vcmask 1043456   ;;  %s336_s19 = scalar_lea.vmem %s284_s18, 32  ;;  %p341_p1 = scmp.lt.s32.totalorder %s284_s18, %s284_s18 }
  0x14   :  { %vm273_vm11 = vcmask 1041409   ;;  %p337_p0 = scmp.ne.s32.totalorder %s284_s18, %s336_s19  ;;  %p342_p2 = scmp.lt.s32.totalorder %s336_s19, %s336_s19 }
  0x16   :  { %131 = vrot.lane.b32.xlu0 %v113_v1, %s362_s0  ;;  %p343_p3 = por %p342_p2, %p341_p1 }
  0x18   :  { %p344_p4 = pnand %p343_p3, %p337_p0 }
  0x1a   :  { %148 = vrot.lane.b32.xlu0 %v144_v0, %s363_s15 }
  0x79   :  { %v87_v5 = vpop.permute.xlu1 %86 }
  0x7d   :  { %v89_v6 = vpop.permute.xlu1 %88 }
  0x80   :  { %v70_v7 = vpop.permute.xlu0 %69 }
  0x81   :  { %v134_v9 = vpop.permute.xlu1 %133  ;;  %v154_v11 = vsel %vm152_vm5, %v414_v15, %v70_v7 }
  0x82   :  { %v159_v17 = vsel %vm157_vm6, %v154_v11, %v87_v5 }
  0x84   :  { %v72_v8 = vpop.permute.xlu0 %71 }
  0x85   :  { %v156_v10 = vsel %vm152_vm5, %v428_v29, %v72_v8  ;;  %v151_v14 = vpop.permute.xlu1 %150 }
  0x86   :  { %v161_v12 = vsel %vm157_vm6, %v156_v10, %v89_v6 }
  0x87   :  { %v166_v16 = vsel %vm162_vm7, %v161_v12, %v134_v9 }
  0x88   :  { %v132_v13 = vpop.permute.xlu0 %131  ;;  %v171_v21 = vsel %vm167_vm8, %v166_v16, %v151_v14 }
  0x89   :  { %v164_v18 = vsel %vm162_vm7, %v159_v17, %v132_v13 }
  0x8c   :  { %v149_v19 = vpop.permute.xlu0 %148 }
  0x8d   :  { %v169_v20 = vsel %vm167_vm8, %v164_v18, %v149_v19 }
  0x8e   :  { %314 = vmatprep.mubr.msk.bf16.mxu0 %vm184_vm9, %v169_v20 }
  0x8f   :  { %315 = vmatmul.mubr.msk.bf16.vlgmr.msra.gmra.mrb[0].mxu0 %vm184_vm9, %v171_v21 }
 0x162   :  { %v316_v22 = vpop.f32.mrb[0].mxu0 }
 0x163   :  { %v227_v23 = vpop.f32.mrb[1].mxu0 }
 0x164   :  { %v317_v24 = vpop.f32.mrb[2].mxu0 }
 0x165   :  { %v251_v25 = vsel %vm242_vm10, %v317_v24, -inf  ;;  %v230_v15 = vpop.f32.mrb[3].mxu0 }
 0x166   :  { %v252_v26 = vmax.f32 %v316_v22, %v251_v25  ;;  %v243_v27 = vsel %vm242_vm10, %v230_v15, -inf }
 0x167   :  { %v244_v28 = vmax.f32 %v227_v23, %v243_v27 }
 0x168   :  { %v253_v29 = vrot.slane %v252_v26, 4 }
 0x169   :  { %v245_v30 = vrot.slane %v244_v28, 4 }
 0x16a   :  { %v254_v31 = vmax.f32 %v252_v26, %v253_v29 }
 0x16b   :  { %v246_v32 = vmax.f32 %v244_v28, %v245_v30 }
 0x16c   :  { %v255_v33 = vrot.slane %v254_v31, 2 }
 0x16d   :  { %v247_v34 = vrot.slane %v246_v32, 2 }
 0x16e   :  { %v256_v35 = vmax.f32 %v254_v31, %v255_v33 }
 0x16f   :  { %v248_v36 = vmax.f32 %v246_v32, %v247_v34 }
 0x170   :  { %v257_v37 = vrot.slane %v256_v35, 1 }
 0x171   :  { %v249_v38 = vrot.slane %v248_v36, 1 }
 0x172   :  { %v258_v40 = vmax.f32 %v256_v35, %v257_v37 }
 0x173   :  { %v250_v41 = vmax.f32 %v248_v36, %v249_v38 }
 0x174   :  { %v267_v42 = vadd.f32 %v305_v39, %v258_v40 }
 0x175   :  { %v266_v43 = vadd.f32 %v305_v39, %v250_v41 }
 0x176   :  { %v269_v44 = vmax.f32 %v267_v42, 0.0 }
 0x177   :  { %v268_v45 = vmax.f32 %v266_v43, 0.0 }
 0x178   :  { %v272_v46 = vrot.slane %v269_v44, 7 }
 0x17a   :  { %v274_v47 = vsel %vm273_vm11, %v272_v46, %v268_v45 }
 0x17b   :  { %276 = vst [vmem:[#allocation2] sm:$0x3] %v274_v47 }
 0x17c   :  { %347 = shalt.err (!%p344_p4)
}
 0x17d   :  { %s348_s21 = scalar_lea.hbm %s473_s3, 32 }
 0x17e   :  { %p349_p5 = scmp.ne.s32.totalorder %s473_s3, %s348_s21  ;;  %p352_p6 = scmp.lt.u32.totalorder %s348_s21, %s473_s3 }
 0x180   :  { %p354_p7 = pnand %p352_p6, %p349_p5 }
 0x182   :  { %357 = shalt.err (!%p354_p7)
}
 0x183   :  { %286 = dma.vmem_to_hbm [thread:$0]  %s284_s18, 32, %s473_s3, [#allocation3]  }
 0x184   :  { %358 = dma.done.wait [#allocation3], 32  }
 0x185   :  { %359 = vsyncadd [#allocation3], 4294967264 }
 0x186   :  { %290 = vsyncpa [#allocation3], 1 }

</bundles_post_ra>
